<compile_context>
chip_gen: v7x
topology: tpu7x:2x2x1
jax: 0.10.0
libtpu: 0.0.40
codegen_flags: <defaults>
</compile_context>

<pallas_src>
import jax
import jax.numpy as jnp
from jax.experimental import pallas as pl
from jax.experimental.pallas import tpu as pltpu


def _round_up(x, m):
    return ((x + m - 1) // m) * m


def _vmem_limit_bytes():
    """Generation-aware VMEM budget: ~7/8 of per-core capacity."""
    cap = 64 * 1024 * 1024  # conservative fallback (fits every generation)
    try:
        info = pltpu.get_tpu_info()
        cap = int(getattr(info, "vmem_capacity_bytes", cap)) or cap
    except Exception:
        pass
    return int(cap * 7 // 8)


def ffn_kernel(x_ref, w1_ref, b1_ref, w2_ref, b2_ref, o_ref, acc_ref, h_ref):
    k = pl.program_id(1)

    @pl.when(k == 0)
    def _init():
        acc_ref[...] = jnp.zeros_like(acc_ref)

    # First Linear chunk on the MXU: (TM, E_p) @ (E_p, TF) with f32 accumulation.
    h = jnp.dot(x_ref[...], w1_ref[...], preferred_element_type=jnp.float32)
    # Bias add + ReLU in f32 on the VPU; stage the hidden chunk in compute_dtype
    # (bf16 by default) to halve the scratch VMEM and the vst/vld round-trip.
    # TODO(synk): dropout with p > 0 would need pltpu.prng_seed/prng_random_bits
    # with a per-tile seed; the module's default p=0.0 makes it the identity.
    h_ref[...] = jnp.maximum(h + b1_ref[...], 0.0).astype(h_ref.dtype)
    # Second Linear chunk, accumulated over F tiles in an f32 accumulator.
    acc_ref[...] += jnp.dot(h_ref[...], w2_ref[...],
                            preferred_element_type=jnp.float32)

    @pl.when(k == pl.num_programs(1) - 1)
    def _finalize():
        o_ref[...] = (acc_ref[...] + b2_ref[...]).astype(o_ref.dtype)


def prepare_ffn_params(w1, b1, w2, b2, *, tf=512, compute_dtype=jnp.bfloat16):
    """One-time weight pad/cast, hoisted out of the per-call path.

    Weights are stored (in_features, out_features), i.e. transposed relative to
    PyTorch's nn.Linear weight layout.
    """
    E, F = w1.shape
    E_p = _round_up(E, 128)
    TF = min(tf, _round_up(F, 128))
    F_p = _round_up(F, TF)
    return {
        "w1": jnp.pad(w1, ((0, E_p - E), (0, F_p - F))).astype(compute_dtype),
        "b1": jnp.pad(b1, (0, F_p - F)).reshape(1, F_p).astype(jnp.float32),
        "w2": jnp.pad(w2, ((0, F_p - F), (0, E_p - E))).astype(compute_dtype),
        "b2": jnp.pad(b2, (0, E_p - E)).reshape(1, E_p).astype(jnp.float32),
        "E": E, "F": F, "E_p": E_p, "F_p": F_p, "TF": TF,
        "compute_dtype": compute_dtype,
    }


def ffn_pallas(x, params, *, tm=512, out_dtype=None):
    """Fused FFN: relu(x @ w1 + b1) @ w2 + b2 on prepared (padded/cast) params."""
    batch, seq, E = x.shape
    assert E == params["E"], "x embed_dim does not match prepared params"
    E_p, F_p, TF = params["E_p"], params["F_p"], params["TF"]
    compute_dtype = params["compute_dtype"]
    out_dtype = x.dtype if out_dtype is None else out_dtype

    M = batch * seq
    TM = min(tm, _round_up(M, 16))   # multiple of 16 for bf16 sublane packing
    M_p = _round_up(M, TM)

    x2d = x.reshape(M, E)
    if (M_p, E_p) != (M, E):         # skip the pad entirely when aligned
        x2d = jnp.pad(x2d, ((0, M_p - M), (0, E_p - E)))
    x2d = x2d.astype(compute_dtype)

    grid = (M_p // TM, F_p // TF)    # M parallel, F reduction (last, "arbitrary")

    out2d = pl.pallas_call(
        ffn_kernel,
        out_shape=jax.ShapeDtypeStruct((M_p, E_p), out_dtype),
        grid_spec=pltpu.PrefetchScalarGridSpec(
            num_scalar_prefetch=0,
            grid=grid,
            in_specs=[
                pl.BlockSpec((TM, E_p), lambda i, k: (i, 0)),   # streamed x tile
                pl.BlockSpec((E_p, TF), lambda i, k: (0, k)),   # W1 F-chunk
                pl.BlockSpec((1, TF),   lambda i, k: (0, k)),   # b1 F-chunk
                pl.BlockSpec((TF, E_p), lambda i, k: (k, 0)),   # W2 F-chunk
                pl.BlockSpec((1, E_p),  lambda i, k: (0, 0)),   # b2 (constant)
            ],
            out_specs=pl.BlockSpec((TM, E_p), lambda i, k: (i, 0)),
            scratch_shapes=[
                pltpu.VMEM((TM, E_p), jnp.float32),    # f32 output accumulator
                pltpu.VMEM((TM, TF), compute_dtype),   # hidden chunk (bf16 default)
            ],
        ),
        compiler_params=pltpu.CompilerParams(
            dimension_semantics=("parallel", "arbitrary"),
            vmem_limit_bytes=_vmem_limit_bytes(),
        ),
    )(x2d, params["w1"], params["b1"], params["w2"], params["b2"])

    return out2d[:M, :E].reshape(batch, seq, E)


def ffn_ref(x, w1, b1, w2, b2):
    h = jnp.maximum(jnp.dot(x, w1) + b1, 0.0)
    return jnp.dot(h, w2) + b2


if __name__ == "__main__":
    # Small shapes consistent with the module's forward (batch, seq, embed_dim).
    batch, seq = 2, 8
    embed_dim = 32
    dim_feedforward = 64   # stands in for the default 2048 at small scale

    key = jax.random.PRNGKey(0)
    kx, kw1, kb1, kw2, kb2 = jax.random.split(key, 5)

    x = jax.random.normal(kx, (batch, seq, embed_dim), dtype=jnp.float32)
    # Deterministic "PyTorch-Linear-like" init (uniform in +-1/sqrt(fan_in)),
    # stored as (in_features, out_features).
    lim1 = 1.0 / jnp.sqrt(embed_dim)
    lim2 = 1.0 / jnp.sqrt(dim_feedforward)
    w1 = jax.random.uniform(kw1, (embed_dim, dim_feedforward),
                            minval=-lim1, maxval=lim1, dtype=jnp.float32)
    b1 = jax.random.uniform(kb1, (dim_feedforward,),
                            minval=-lim1, maxval=lim1, dtype=jnp.float32)
    w2 = jax.random.uniform(kw2, (dim_feedforward, embed_dim),
                            minval=-lim2, maxval=lim2, dtype=jnp.float32)
    b2 = jax.random.uniform(kb2, (embed_dim,),
                            minval=-lim2, maxval=lim2, dtype=jnp.float32)

    ref = ffn_ref(x, w1, b1, w2, b2)

    # Default path: bf16 MXU operands, f32 accumulation -> loosened tolerance.
    params_bf16 = prepare_ffn_params(w1, b1, w2, b2, compute_dtype=jnp.bfloat16)
    out = jax.block_until_ready(ffn_pallas(x, params_bf16))
    assert out.shape == x.shape
    assert jnp.allclose(out, ref, atol=2e-2, rtol=2e-2), "bf16 path mismatch vs reference"

    # Exact-precision parity path (f32 operands) matches the f32 reference tightly.
    params_f32 = prepare_ffn_params(w1, b1, w2, b2, compute_dtype=jnp.float32)
    out_f32 = jax.block_until_ready(ffn_pallas(x, params_f32))
    assert jnp.allclose(out_f32, ref, atol=1e-5, rtol=1e-5), "f32 path mismatch vs reference"

    print("KERNEL_OK")
</pallas_src>

<mosaic_0001>
module attributes {stable_mosaic.version = 11 : i64} {
  func.func @ffn_kernel(%arg0: i32, %arg1: i32, %arg2: memref<16x128xbf16, #tpu.memory_space<vmem>>, %arg3: memref<128x128xbf16, #tpu.memory_space<vmem>>, %arg4: memref<1x128xf32, #tpu.memory_space<vmem>>, %arg5: memref<128x128xbf16, #tpu.memory_space<vmem>>, %arg6: memref<1x128xf32, #tpu.memory_space<vmem>>, %arg7: memref<16x128xf32, #tpu.memory_space<vmem>>, %arg8: memref<16x128xf32, #tpu.memory_space<vmem>>, %arg9: memref<16x128xbf16, #tpu.memory_space<vmem>>) attributes {dimension_semantics = [#tpu.dimension_semantics<parallel>, #tpu.dimension_semantics<arbitrary>], iteration_bounds = array<i64: 1, 1>, scalar_prefetch = 0 : i64, scratch_operands = 2 : i64, tpu.core_type = #tpu.core_type<tc>, window_params = [{transform_indices = @transform_0, window_bounds = array<i64: 16, 128>}, {transform_indices = @transform_1, window_bounds = array<i64: 128, 128>}, {transform_indices = @transform_2, window_bounds = array<i64: 1, 128>}, {transform_indices = @transform_3, window_bounds = array<i64: 128, 128>}, {pipeline_mode = #tpu.pipeline_mode<synchronous>, transform_indices = @transform_4, window_bounds = array<i64: 1, 128>}, {transform_indices = @transform_5, window_bounds = array<i64: 16, 128>}]} {
    %c0_i32 = arith.constant 0 : i32
    %0 = arith.cmpi eq, %arg1, %c0_i32 : i32
    %1 = arith.extui %0 : i1 to i32
    %c0_i32_0 = arith.constant 0 : i32
    %2 = arith.cmpi ne, %1, %c0_i32_0 : i32
    scf.if %2 {
      %cst_20 = arith.constant 0.000000e+00 : f32
      %22 = vector.broadcast %cst_20 : f32 to vector<16x128xf32>
      %c0_21 = arith.constant 0 : index
      %c0_22 = arith.constant 0 : index
      %23 = vector.load %arg8[%c0_21, %c0_22] : memref<16x128xf32, #tpu.memory_space<vmem>>, vector<16x128xf32>
      tpu.vector_store %arg8[%c0_21, %c0_22], %22 {strides = array<i32>} : memref<16x128xf32, #tpu.memory_space<vmem>>, vector<16x128xf32>,
    } else {
    }
    %c0 = arith.constant 0 : index
    %c0_1 = arith.constant 0 : index
    %3 = vector.load %arg2[%c0, %c0_1] : memref<16x128xbf16, #tpu.memory_space<vmem>>, vector<16x128xbf16>
    %c0_2 = arith.constant 0 : index
    %c0_3 = arith.constant 0 : index
    %4 = vector.load %arg3[%c0_2, %c0_3] : memref<128x128xbf16, #tpu.memory_space<vmem>>, vector<128x128xbf16>
    %cst = arith.constant dense<0.000000e+00> : vector<16x128xf32>
    %5 = tpu.matmul %3, %4, %cst {dimension_numbers = #tpu.dot_dimension_numbers<[1], [0], [0], [1], [0, 0, 1, 1], [], []>} : vector<16x128xbf16>, vector<128x128xbf16>, vector<16x128xf32> -> vector<16x128xf32>
    %c0_4 = arith.constant 0 : index
    %c0_5 = arith.constant 0 : index
    %6 = vector.load %arg4[%c0_4, %c0_5] : memref<1x128xf32, #tpu.memory_space<vmem>>, vector<1x128xf32>
    %7 = vector.broadcast %6 : vector<1x128xf32> to vector<16x128xf32>
    %8 = arith.addf %5, %7 : vector<16x128xf32>
    %cst_6 = arith.constant 0.000000e+00 : f32
    %9 = vector.broadcast %cst_6 : f32 to vector<16x128xf32>
    %10 = arith.maximumf %8, %9 : vector<16x128xf32>
    %11 = arith.truncf %10 : vector<16x128xf32> to vector<16x128xbf16>
    %c0_7 = arith.constant 0 : index
    %c0_8 = arith.constant 0 : index
    %12 = vector.load %arg9[%c0_7, %c0_8] : memref<16x128xbf16, #tpu.memory_space<vmem>>, vector<16x128xbf16>
    tpu.vector_store %arg9[%c0_7, %c0_8], %11 {strides = array<i32>} : memref<16x128xbf16, #tpu.memory_space<vmem>>, vector<16x128xbf16>,
    %c0_9 = arith.constant 0 : index
    %c0_10 = arith.constant 0 : index
    %13 = vector.load %arg8[%c0_9, %c0_10] : memref<16x128xf32, #tpu.memory_space<vmem>>, vector<16x128xf32>
    %c0_11 = arith.constant 0 : index
    %c0_12 = arith.constant 0 : index
    %14 = vector.load %arg9[%c0_11, %c0_12] : memref<16x128xbf16, #tpu.memory_space<vmem>>, vector<16x128xbf16>
    %c0_13 = arith.constant 0 : index
    %c0_14 = arith.constant 0 : index
    %15 = vector.load %arg5[%c0_13, %c0_14] : memref<128x128xbf16, #tpu.memory_space<vmem>>, vector<128x128xbf16>
    %cst_15 = arith.constant dense<0.000000e+00> : vector<16x128xf32>
    %16 = tpu.matmul %14, %15, %cst_15 {dimension_numbers = #tpu.dot_dimension_numbers<[1], [0], [0], [1], [0, 0, 1, 1], [], []>} : vector<16x128xbf16>, vector<128x128xbf16>, vector<16x128xf32> -> vector<16x128xf32>
    %17 = arith.addf %13, %16 : vector<16x128xf32>
    %c0_16 = arith.constant 0 : index
    %c0_17 = arith.constant 0 : index
    %18 = vector.load %arg8[%c0_16, %c0_17] : memref<16x128xf32, #tpu.memory_space<vmem>>, vector<16x128xf32>
    tpu.vector_store %arg8[%c0_16, %c0_17], %17 {strides = array<i32>} : memref<16x128xf32, #tpu.memory_space<vmem>>, vector<16x128xf32>,
    %c0_i32_18 = arith.constant 0 : i32
    %19 = arith.cmpi eq, %arg1, %c0_i32_18 : i32
    %20 = arith.extui %19 : i1 to i32
    %c0_i32_19 = arith.constant 0 : i32
    %21 = arith.cmpi ne, %20, %c0_i32_19 : i32
    scf.if %21 {
      %c0_20 = arith.constant 0 : index
      %c0_21 = arith.constant 0 : index
      %22 = vector.load %arg8[%c0_20, %c0_21] : memref<16x128xf32, #tpu.memory_space<vmem>>, vector<16x128xf32>
      %c0_22 = arith.constant 0 : index
      %c0_23 = arith.constant 0 : index
      %23 = vector.load %arg6[%c0_22, %c0_23] : memref<1x128xf32, #tpu.memory_space<vmem>>, vector<1x128xf32>
      %24 = vector.broadcast %23 : vector<1x128xf32> to vector<16x128xf32>
      %25 = arith.addf %22, %24 : vector<16x128xf32>
      %c0_24 = arith.constant 0 : index
      %c0_25 = arith.constant 0 : index
      %26 = vector.load %arg7[%c0_24, %c0_25] : memref<16x128xf32, #tpu.memory_space<vmem>>, vector<16x128xf32>
      tpu.vector_store %arg7[%c0_24, %c0_25], %25 {strides = array<i32>} : memref<16x128xf32, #tpu.memory_space<vmem>>, vector<16x128xf32>,
    } else {
    }
    return
  }
  func.func @transform_0(%arg0: i32, %arg1: i32) -> (i32, i32) {
    %c0_i32 = arith.constant 0 : i32
    %c0_i32_0 = arith.constant 0 : i32
    return %arg0, %c0_i32 : i32, i32
  }
  func.func @transform_1(%arg0: i32, %arg1: i32) -> (i32, i32) {
    %c0_i32 = arith.constant 0 : i32
    %c0_i32_0 = arith.constant 0 : i32
    return %c0_i32, %arg1 : i32, i32
  }
  func.func @transform_2(%arg0: i32, %arg1: i32) -> (i32, i32) {
    %c0_i32 = arith.constant 0 : i32
    %c0_i32_0 = arith.constant 0 : i32
    return %c0_i32, %arg1 : i32, i32
  }
  func.func @transform_3(%arg0: i32, %arg1: i32) -> (i32, i32) {
    %c0_i32 = arith.constant 0 : i32
    %c0_i32_0 = arith.constant 0 : i32
    return %arg1, %c0_i32 : i32, i32
  }
  func.func @transform_4(%arg0: i32, %arg1: i32) -> (i32, i32) {
    %c0_i32 = arith.constant 0 : i32
    %c0_i32_0 = arith.constant 0 : i32
    %c0_i32_1 = arith.constant 0 : i32
    return %c0_i32, %c0_i32_0 : i32, i32
  }
  func.func @transform_5(%arg0: i32, %arg1: i32) -> (i32, i32) {
    %c0_i32 = arith.constant 0 : i32
    %c0_i32_0 = arith.constant 0 : i32
    return %arg0, %c0_i32 : i32, i32
  }
}

</mosaic_0001>

<bundles_post_ra>
// kernel: tpu_custom_call.1
= control target key start
LH: loop header
LB: loop body
LE: loop exit
PB: predicated region body
PF: predicated region fallthrough
CT: control target
= control target key end

     0   :  { %10 = vsyncpa [#allocation5], 0  ;;  %s647_s0 = inlined_call_operand.hbm [shape: bf16[16,128], index: 0, kind: input, shape index: {}]   ;;  %s648_s1 = inlined_call_operand.hbm [shape: bf16[128,128], index: 1, kind: input, shape index: {}]   ;;  %s649_s2 = inlined_call_operand.vmem [shape: f32[1,128], index: 2, kind: input, shape index: {}]   ;;  %s650_s3 = inlined_call_operand.hbm [shape: bf16[128,128], index: 3, kind: input, shape index: {}]   ;;  %s651_s4 = inlined_call_operand.vmem [shape: f32[1,128], index: 4, kind: input, shape index: {}]   ;;  %s652_s5 = inlined_call_operand.hbm [shape: f32[16,128], index: 5, kind: output, shape index: {}]  }
   0x1   :  { %11 = vsyncpa [#allocation8], 0 }
   0x2   :  { %12 = vsyncpa [#allocation6], 0  ;;  %s537_s18 = smov [#allocation7]   ;;  %s538_s20 = smov [#allocation4]  }
   0x3   :  { %s30_s19 = sshll.u32 %s537_s18, 4  ;;  %s18_s21 = sshll.u32 %s538_s20, 4  ;;  %s31_s19 = int_to_ptr.vmem [resolvable:$true] %s30_s19  ;;  %s577_s21 = int_to_ptr.vmem [resolvable:$true] %s18_s21 }
   0x4   :  { %s443_s24 = scalar_lea.hbm %s648_s1, 1024 }
   0x5   :  { %p444_p0 = scmp.ne.s32.totalorder %s648_s1, %s443_s24  ;;  %p447_p1 = scmp.lt.u32.totalorder %s443_s24, %s648_s1 }
   0x7   :  { %p449_p2 = pnand %p447_p1, %p444_p0 }
   0x9   :  { %452 = shalt.err (!%p449_p2)
}
   0xa   :  { %s453_s29 = scalar_lea.vmem %s31_s19, 1024  ;;  %p458_p4 = scmp.lt.s32.totalorder %s31_s19, %s31_s19 }
   0xb   :  { %p454_p3 = scmp.ne.s32.totalorder %s31_s19, %s453_s29  ;;  %p459_p5 = scmp.lt.s32.totalorder %s453_s29, %s453_s29 }
   0xd   :  { %p460_p6 = por %p459_p5, %p458_p4 }
   0xf   :  { %p461_p7 = pnand %p460_p6, %p454_p3 }
  0x11   :  { %464 = shalt.err (!%p461_p7)
}
  0x12   :  { %s539_s30 = smov 64   ;;  %s540_s6 = smov 4  }
  0x13   :  { %36 = dma.hbm_to_vmem [thread:$0]  %s648_s1, 1024, %s31_s19, [#allocation8], %s539_s30, %s539_s30, %s540_s6  }
  0x14   :  { %s465_s11 = scalar_lea.hbm %s647_s0, 128 }
  0x15   :  { %p466_p8 = scmp.ne.s32.totalorder %s647_s0, %s465_s11  ;;  %p469_p9 = scmp.lt.u32.totalorder %s465_s11, %s647_s0 }
  0x17   :  { %p471_p10 = pnand %p469_p9, %p466_p8 }
  0x19   :  { %474 = shalt.err (!%p471_p10)
}
  0x1a   :  { %s475_s16 = scalar_lea.vmem %s577_s21, 128  ;;  %p480_p12 = scmp.lt.s32.totalorder %s577_s21, %s577_s21 }
  0x1b   :  { %p476_p11 = scmp.ne.s32.totalorder %s577_s21, %s475_s16  ;;  %p481_p13 = scmp.lt.s32.totalorder %s475_s16, %s475_s16 }
  0x1d   :  { %p482_p0 = por %p481_p13, %p480_p12 }
  0x1f   :  { %p483_p1 = pnand %p482_p0, %p476_p11 }
  0x21   :  { %486 = shalt.err (!%p483_p1)
}
  0x22   :  { %24 = dma.hbm_to_vmem [thread:$0]  %s647_s0, 128, %s577_s21, [#allocation5], %s539_s30, %s539_s30, %s540_s6  }
  0x23   :  { %s541_s18 = smov [#allocation9]   ;;  %s487_s23 = scalar_lea.hbm %s650_s3, 1024 }
  0x24   :  { %s44_s19 = sshll.u32 %s541_s18, 4  ;;  %p488_p2 = scmp.ne.s32.totalorder %s650_s3, %s487_s23  ;;  %s45_s19 = int_to_ptr.vmem [resolvable:$true] %s44_s19 }
  0x25   :  { %p491_p3 = scmp.lt.u32.totalorder %s487_s23, %s650_s3 }
  0x27   :  { %p493_p4 = pnand %p491_p3, %p488_p2 }
  0x29   :  { %496 = shalt.err (!%p493_p4)
}
  0x2a   :  { %s497_s28 = scalar_lea.vmem %s45_s19, 1024  ;;  %p502_p6 = scmp.lt.s32.totalorder %s45_s19, %s45_s19 }
  0x2b   :  { %p498_p5 = scmp.ne.s32.totalorder %s45_s19, %s497_s28  ;;  %p503_p7 = scmp.lt.s32.totalorder %s497_s28, %s497_s28 }
  0x2d   :  { %p504_p8 = por %p503_p7, %p502_p6 }
  0x2f   :  { %p505_p9 = pnand %p504_p8, %p498_p5 }
  0x31   :  { %508 = shalt.err (!%p505_p9)
}
  0x32   :  { %50 = dma.hbm_to_vmem [thread:$0]  %s650_s3, 1024, %s45_s19, [#allocation8], %s539_s30, %s539_s30, %s540_s6  }
  0x33   :  { %531 = dma.done.wait [#allocation5], 128  }
  0x34   :  { %532 = vsyncadd [#allocation5], 4294967168 }
  0x35   :  { %533 = dma.done.wait [#allocation8], 2048  }
  0x36   :  { %534 = vsyncadd [#allocation8], 4294965248  ;;  %v542_v0 = vmov 0.0   ;;  %vm543_vm0 = vmmov 0   ;;  %v426_v1 = vld [vmem:[#allocation7] sm:$0xff]   ;;  %v427_v2 = vld [vmem:[#allocation7 + $0x8] sm:$0xff]  }
  0x37   :  { %376 = vmatprep.subr.bf16.mxu0 %v542_v0  ;;  %392 = vmatprep.mubr.msk.bf16.mxu0 %vm543_vm0, %v542_v0  ;;  %v428_v3 = vld [vmem:[#allocation7 + $0x10] sm:$0xff]   ;;  %v435_v4 = vld [vmem:[#allocation9] sm:$0xff]   ;;  %v429_v5 = vld [vmem:[#allocation7 + $0x18] sm:$0xff]   ;;  %s544_s7 = smov [#allocation10]  }
  0x38   :  { %396 = vmatprep.subr.bf16.mxu1 %v542_v0  ;;  %412 = vmatprep.mubr.msk.bf16.mxu1 %vm543_vm0, %v542_v0  ;;  %v436_v6 = vld [vmem:[#allocation9 + $0x8] sm:$0xff]   ;;  %v430_v7 = vld [vmem:[#allocation7 + $0x20] sm:$0xff]   ;;  %v437_v8 = vld [vmem:[#allocation9 + $0x10] sm:$0xff]   ;;  %s326_s8 = sshll.u32 %s544_s7, 4  ;;  %s327_s8 = int_to_ptr.vmem [resolvable:$true] %s326_s8 }
  0x39   :  { %377 = vmatpush3.bf16.msra.mxu0 %v426_v1  ;;  %397 = vmatpush3.bf16.msra.mxu1 %v435_v4  ;;  %v431_v9 = vld [vmem:[#allocation7 + $0x28] sm:$0xff]   ;;  %v438_v10 = vld [vmem:[#allocation9 + $0x18] sm:$0xff]   ;;  %v432_v11 = vld [vmem:[#allocation7 + $0x30] sm:$0xff]   ;;  %p514_p11 = scmp.lt.s32.totalorder %s327_s8, %s327_s8 }
  0x3a   :  { %378 = vmatprep.subr.bf16.mxu0 %v542_v0  ;;  %398 = vmatprep.subr.bf16.mxu1 %v542_v0  ;;  %v439_v12 = vld [vmem:[#allocation9 + $0x20] sm:$0xff]   ;;  %v433_v13 = vld [vmem:[#allocation7 + $0x38] sm:$0xff]   ;;  %v440_v14 = vld [vmem:[#allocation9 + $0x28] sm:$0xff]  }
  0x3b   :  { %v434_v15 = vld [vmem:[#allocation4] sm:$0xff]   ;;  %v441_v16 = vld [vmem:[#allocation9 + $0x30] sm:$0xff]  }
  0x3c   :  { %v442_v17 = vld [vmem:[#allocation9 + $0x38] sm:$0xff]  }
  0x3d   :  { %379 = vmatpush3.bf16.msra.mxu0 %v427_v2  ;;  %399 = vmatpush3.bf16.msra.mxu1 %v436_v6  ;;  %v339_v18 = vld [vmem:[%s649_s2] ss:$0 sm:$0xff]  ;;  %s509_s2 = scalar_lea.vmem %s327_s8, 256 }
  0x3e   :  { %380 = vmatprep.subr.bf16.mxu0 %v542_v0  ;;  %400 = vmatprep.subr.bf16.mxu1 %v542_v0  ;;  %v357_v28 = vld [vmem:[%s651_s4] ss:$0 sm:$0xff]  ;;  %p510_p10 = scmp.ne.s32.totalorder %s327_s8, %s509_s2  ;;  %p515_p12 = scmp.lt.s32.totalorder %s509_s2, %s509_s2 }
  0x40   :  { %p516_p13 = por %p515_p12, %p514_p11 }
  0x41   :  { %381 = vmatpush3.bf16.msra.mxu0 %v428_v3  ;;  %401 = vmatpush3.bf16.msra.mxu1 %v437_v8 }
  0x42   :  { %382 = vmatprep.subr.bf16.mxu0 %v542_v0  ;;  %402 = vmatprep.subr.bf16.mxu1 %v542_v0  ;;  %p517_p0 = pnand %p516_p13, %p510_p10 }
  0x45   :  { %383 = vmatpush3.bf16.msra.mxu0 %v429_v5  ;;  %403 = vmatpush3.bf16.msra.mxu1 %v438_v10 }
  0x46   :  { %384 = vmatprep.subr.bf16.mxu0 %v542_v0  ;;  %404 = vmatprep.subr.bf16.mxu1 %v542_v0 }
  0x49   :  { %385 = vmatpush3.bf16.msra.mxu0 %v430_v7  ;;  %405 = vmatpush3.bf16.msra.mxu1 %v439_v12 }
  0x4a   :  { %386 = vmatprep.subr.bf16.mxu0 %v542_v0  ;;  %406 = vmatprep.subr.bf16.mxu1 %v542_v0 }
  0x4d   :  { %387 = vmatpush3.bf16.msra.mxu0 %v431_v9  ;;  %407 = vmatpush3.bf16.msra.mxu1 %v440_v14 }
  0x4e   :  { %388 = vmatprep.subr.bf16.mxu0 %v542_v0  ;;  %408 = vmatprep.subr.bf16.mxu1 %v542_v0 }
  0x51   :  { %389 = vmatpush3.bf16.msra.mxu0 %v432_v11  ;;  %409 = vmatpush3.bf16.msra.mxu1 %v441_v16 }
  0x52   :  { %390 = vmatprep.subr.bf16.mxu0 %v542_v0  ;;  %410 = vmatprep.subr.bf16.mxu1 %v542_v0 }
  0x55   :  { %391 = vmatpush3.bf16.msra.mxu0 %v433_v13  ;;  %411 = vmatpush3.bf16.msra.mxu1 %v442_v17 }
  0x58   :  { %393 = vmatmul.mubr.bf16.vlgmr.msra.gmra.mrb[0].mxu0 %v434_v15 }
 0x12b   :  { %v182_v19 = vpop.f32.mrb[0].mxu0 }
 0x12c   :  { %v183_v20 = vadd.f32 %v339_v18, %v182_v19  ;;  %v394_v21 = vpop.f32.mrb[1].mxu0 }
 0x12d   :  { %v185_v22 = vpop.f32.mrb[2].mxu0 }
 0x12e   :  { %v186_v23 = vadd.f32 %v339_v18, %v185_v22  ;;  %v395_v24 = vpop.f32.mrb[3].mxu0  ;;  %v189_v25 = vmax.f32 %v183_v20, 0.0 }
 0x130   :  { %v190_v26 = vmax.f32 %v186_v23, 0.0 }
 0x132   :  { %v191_v27 = vpack.c.bf16 %v190_v26, %v189_v25 }
 0x134   :  { %413 = vmatmul.mubr.bf16.vlgmr.msra.gmra.mrb[0].mxu1 %v191_v27 }
 0x207   :  { %v294_v29 = vpop.f32.mrb[0].mxu1 }
 0x208   :  { %v317_v30 = vadd.f32 %v357_v28, %v294_v29  ;;  %v414_v31 = vpop.f32.mrb[1].mxu1 }
 0x209   :  { %v297_v32 = vpop.f32.mrb[2].mxu1 }
 0x20a   :  { %319 = vst [vmem:[#allocation10] sm:$0xff] %v317_v30  ;;  %v318_v33 = vadd.f32 %v357_v28, %v297_v32  ;;  %v415_v34 = vpop.f32.mrb[3].mxu1 }
 0x20c   :  { %320 = vst [vmem:[#allocation10 + $0x8] sm:$0xff] %v318_v33 }
 0x20d   :  { %520 = shalt.err (!%p517_p0)
}
 0x20e   :  { %s521_s10 = scalar_lea.hbm %s652_s5, 256 }
 0x20f   :  { %p522_p1 = scmp.ne.s32.totalorder %s652_s5, %s521_s10  ;;  %p525_p2 = scmp.lt.u32.totalorder %s521_s10, %s652_s5 }
 0x211   :  { %p527_p3 = pnand %p525_p2, %p522_p1 }
 0x213   :  { %530 = shalt.err (!%p527_p3)
}
 0x214   :  { %s545_s15 = smov 128   ;;  %s546_s16 = smov 8  }
 0x215   :  { %332 = dma.vmem_to_hbm [thread:$0]  %s327_s8, 256, %s652_s5, [#allocation6], %s545_s15, %s545_s15, %s546_s16  }
 0x216   :  { %535 = dma.done.wait [#allocation6], 256  }
 0x217   :  { %536 = vsyncadd [#allocation6], 4294967040 }
 0x218   :  { %336 = vsyncpa [#allocation5], 1 }
 0x219   :  { %337 = vsyncpa [#allocation8], 1 }
 0x21a   :  { %338 = vsyncpa [#allocation6], 1 }

</bundles_post_ra>
